<compile_context>
chip_gen: v7x
topology: tpu7x:2x2x1
jax: 0.10.0
libtpu: 0.0.40
codegen_flags: <defaults>
</compile_context>

<pallas_src>
import functools

import jax
import jax.numpy as jnp
from jax.experimental import pallas as pl
from jax.experimental.pallas import tpu as pltpu

_LANE = 128


def _dropout_scale_kernel(pe_ref, bits_ref, o_ref, *, threshold, scale):
    """Fused dropout-apply on one lane-dense slab.

    pe_ref:   (R, C) positional-encoding slab in VMEM
    bits_ref: (R, C) uint32 random bits in VMEM
    o_ref:    (R, C) output slab
    keep prob = 1 - threshold / 2^24; kept elements scaled by 1/(1-p).
    """
    pe = pe_ref[...].astype(jnp.float32)                 # math in f32 (v5e: no bf16 VALU)
    bits24 = (bits_ref[...] & jnp.uint32(0x00FFFFFF)).astype(jnp.int32)
    keep = bits24 >= jnp.int32(threshold)
    o_ref[...] = jnp.where(keep, pe * jnp.float32(scale),
                           jnp.float32(0.0)).astype(o_ref.dtype)


def build_pe_table(d_model, max_len=81, dtype=jnp.float32):
    """Mirrors PositionalEncoding.__init__ (the registered 'pe' buffer), as 2-D
    (max_len, d_model); the singleton batch dim is re-inserted on output."""
    position = jnp.arange(max_len, dtype=jnp.float32)[:, None]                 # (max_len, 1)
    div_term = jnp.exp(jnp.arange(0, d_model, 2, dtype=jnp.float32)
                       * (-jnp.log(10000.0) / d_model))                        # (d_model//2,)
    pe = jnp.zeros((max_len, d_model), dtype=jnp.float32)
    pe = pe.at[:, 0::2].set(jnp.sin(position * div_term))
    pe = pe.at[:, 1::2].set(jnp.cos(position * div_term))
    return pe.astype(dtype)                                                    # (max_len, d_model)


def positional_encoding(x, pe, *, p=0.1, training=False, rng=None, out_dtype=None):
    """Forward of PositionalEncoding.

    x:   (seq_len, batch, d_model) -- only x.shape[0] is used (as in torch forward)
    pe:  (max_len, d_model)        -- buffer from build_pe_table
    rng: optional jax PRNG key for the dropout mask (training mode)
    returns (seq_len, 1, d_model)
    """
    seq_len = x.shape[0]
    d_model = pe.shape[-1]
    out_dtype = pe.dtype if out_dtype is None else out_dtype

    # --- eval mode / p == 0: dropout is the identity -> no kernel launch at all ---
    if (not training) or p <= 0.0:
        return pe[:seq_len, None, :].astype(out_dtype)

    # --- p >= 1: everything dropped (avoid inf scale in the select) ---
    if p >= 1.0:
        return jnp.zeros((seq_len, 1, d_model), out_dtype)

    if rng is None:
        rng = jax.random.PRNGKey(0)

    # Present a lane-dense slab to the kernel.
    if d_model % _LANE == 0:
        slab = pe[:seq_len]                                                    # (S, D), already lane-dense
    else:
        n = seq_len * d_model
        rows = -(-n // _LANE)
        flat = pe[:seq_len].reshape(n)
        if rows * _LANE != n:
            flat = jnp.pad(flat, (0, rows * _LANE - n))
        slab = flat.reshape(rows, _LANE)

    bits = jax.random.bits(rng, slab.shape, dtype=jnp.uint32)
    threshold = int(round(p * (1 << 24)))          # keep prob = 1 - threshold/2^24
    scale = 1.0 / (1.0 - p)

    kernel = functools.partial(_dropout_scale_kernel, threshold=threshold, scale=scale)
    bytes_accessed = int(slab.size * (slab.dtype.itemsize + 4
                                      + jnp.dtype(out_dtype).itemsize))
    out = pl.pallas_call(
        kernel,
        out_shape=jax.ShapeDtypeStruct(slab.shape, out_dtype),
        in_specs=[
            pl.BlockSpec(memory_space=pltpu.MemorySpace.VMEM),   # pe slab, whole-array resident
            pl.BlockSpec(memory_space=pltpu.MemorySpace.VMEM),   # random bits
        ],
        out_specs=pl.BlockSpec(memory_space=pltpu.MemorySpace.VMEM),
        cost_estimate=pl.CostEstimate(flops=3 * slab.size, transcendentals=0,
                                      bytes_accessed=bytes_accessed),
    )(slab, bits)

    if d_model % _LANE == 0:
        return out[:, None, :]                                                 # (S, 1, D)
    return out.reshape(-1)[: seq_len * d_model].reshape(seq_len, 1, d_model)


def positional_encoding_ref(x, pe):
    """Pure-JAX reference mirroring PositionalEncoding.forward in eval mode."""
    return pe[: x.shape[0], None, :]


if __name__ == "__main__":
    # Small shapes consistent with the module: x is (seq, batch, d_model).
    seq_len, batch, d_model = 8, 2, 32
    max_len = 81
    p = 0.1

    key = jax.random.PRNGKey(0)
    kx, kdrop = jax.random.split(key)
    x = jax.random.normal(kx, (seq_len, batch, d_model), dtype=jnp.float32)

    pe = build_pe_table(d_model, max_len=max_len)          # the registered buffer
    ref = positional_encoding_ref(x, pe)                   # (S, 1, D)

    # --- eval-mode forward (dropout = identity): bypasses the kernel entirely ---
    out_eval = jax.block_until_ready(positional_encoding(x, pe, p=p, training=False))
    assert out_eval.shape == (seq_len, 1, d_model)
    assert jnp.allclose(out_eval, ref, atol=1e-6, rtol=1e-6)

    # --- training-mode forward: inverted dropout, fused in the Pallas kernel ---
    out_train = jax.block_until_ready(
        positional_encoding(x, pe, p=p, training=True, rng=kdrop))
    assert out_train.shape == (seq_len, 1, d_model)
    # Every surviving element must equal pe / (1 - p); dropped elements are exactly 0.
    kept = out_train != 0.0
    expected = ref / (1.0 - p)
    assert jnp.allclose(jnp.where(kept, out_train, 0.0),
                        jnp.where(kept, expected, 0.0), atol=1e-5, rtol=1e-5)

    print("KERNEL_OK")
</pallas_src>

<mosaic_0001>
module attributes {stable_mosaic.version = 11 : i64} {
  func.func @_dropout_scale_kernel(%arg0: memref<2x128xf32, #tpu.memory_space<vmem>>, %arg1: memref<2x128xi32, #tpu.memory_space<vmem>>, %arg2: memref<2x128xf32, #tpu.memory_space<vmem>>) attributes {dimension_semantics = [], scalar_prefetch = 0 : i64, scratch_operands = 0 : i64, tpu.core_type = #tpu.core_type<tc>} {
    %c0 = arith.constant 0 : index
    %c0_0 = arith.constant 0 : index
    %0 = vector.load %arg0[%c0, %c0_0] : memref<2x128xf32, #tpu.memory_space<vmem>>, vector<2x128xf32>
    %c0_1 = arith.constant 0 : index
    %c0_2 = arith.constant 0 : index
    %1 = vector.load %arg1[%c0_1, %c0_2] : memref<2x128xi32, #tpu.memory_space<vmem>>, vector<2x128xi32>
    %c16777215_i32 = arith.constant 16777215 : i32
    %2 = vector.broadcast %c16777215_i32 : i32 to vector<2x128xi32>
    %3 = arith.andi %1, %2 : vector<2x128xi32>
    %c1677722_i32 = arith.constant 1677722 : i32
    %4 = vector.broadcast %c1677722_i32 : i32 to vector<2x128xi32>
    %5 = arith.cmpi sge, %3, %4 : vector<2x128xi32>
    %cst = arith.constant 1.11111116 : f32
    %6 = vector.broadcast %cst : f32 to vector<2x128xf32>
    %7 = arith.mulf %0, %6 : vector<2x128xf32>
    %cst_3 = arith.constant 0.000000e+00 : f32
    %8 = vector.broadcast %cst_3 : f32 to vector<2x128xf32>
    %9 = arith.select %5, %7, %8 : vector<2x128xi1>, vector<2x128xf32>
    %c0_4 = arith.constant 0 : index
    %c0_5 = arith.constant 0 : index
    %10 = vector.load %arg2[%c0_4, %c0_5] : memref<2x128xf32, #tpu.memory_space<vmem>>, vector<2x128xf32>
    tpu.vector_store %arg2[%c0_4, %c0_5], %9 {strides = array<i32>} : memref<2x128xf32, #tpu.memory_space<vmem>>, vector<2x128xf32>,
    return
  }
}

</mosaic_0001>

<bundles_post_ra>
// kernel: tpu_custom_call.1
= control target key start
LH: loop header
LB: loop body
LE: loop exit
PB: predicated region body
PF: predicated region fallthrough
CT: control target
= control target key end

     0   :  { %7 = vsyncpa [#allocation3], 0  ;;  %s140_s0 = inlined_call_operand.hbm [shape: f32[2,128], index: 0, kind: input, shape index: {}]   ;;  %s141_s1 = inlined_call_operand.vmem [shape: u32[2,128], index: 1, kind: input, shape index: {}]   ;;  %s142_s2 = inlined_call_operand.hbm [shape: f32[2,128], index: 2, kind: output, shape index: {}]  }
   0x1   :  { %8 = vsyncpa [#allocation4], 0  ;;  %s96_s9 = smov [#allocation2]   ;;  %s48_s13 = scalar_lea.hbm %s140_s0, 32 }
   0x2   :  { %s15_s10 = sshll.u32 %s96_s9, 4  ;;  %p49_p0 = scmp.ne.s32.totalorder %s140_s0, %s48_s13  ;;  %s16_s10 = int_to_ptr.vmem [resolvable:$true] %s15_s10 }
   0x3   :  { %p52_p1 = scmp.lt.u32.totalorder %s48_s13, %s140_s0 }
   0x5   :  { %p54_p2 = pnand %p52_p1, %p49_p0 }
   0x7   :  { %57 = shalt.err (!%p54_p2)
}
   0x8   :  { %s58_s18 = scalar_lea.vmem %s16_s10, 32  ;;  %p63_p4 = scmp.lt.s32.totalorder %s16_s10, %s16_s10 }
   0x9   :  { %p59_p3 = scmp.ne.s32.totalorder %s16_s10, %s58_s18  ;;  %p64_p5 = scmp.lt.s32.totalorder %s58_s18, %s58_s18 }
   0xb   :  { %p65_p6 = por %p64_p5, %p63_p4 }
   0xd   :  { %p66_p7 = pnand %p65_p6, %p59_p3 }
   0xf   :  { %69 = shalt.err (!%p66_p7)
}
  0x10   :  { %18 = dma.hbm_to_vmem [thread:$0]  %s140_s0, 32, %s16_s10, [#allocation3]  }
  0x11   :  { %92 = dma.done.wait [#allocation3], 32  }
  0x12   :  { %93 = vsyncadd [#allocation3], 4294967264  ;;  %v24_v0 = vld [vmem:[#allocation2] sm:$0x3]  ;;  %s97_s23 = smov [#allocation5]  }
  0x13   :  { %v25_v1 = vld [vmem:[%s141_s1] sm:$0x3]  ;;  %s37_s24 = sshll.u32 %s97_s23, 4  ;;  %v28_v3 = vmul.f32 1.1111112, %v24_v0  ;;  %s38_s24 = int_to_ptr.vmem [resolvable:$true] %s37_s24 }
  0x14   :  { %v26_v2 = vand.u32 16777215, %v25_v1  ;;  %s70_s25 = scalar_lea.vmem %s38_s24, 32  ;;  %p75_p9 = scmp.lt.s32.totalorder %s38_s24, %s38_s24 }
  0x15   :  { %p71_p8 = scmp.ne.s32.totalorder %s38_s24, %s70_s25  ;;  %p76_p10 = scmp.lt.s32.totalorder %s70_s25, %s70_s25 }
  0x16   :  { %vm27_vm0 = vcmp.ge.s32.totalorder %v26_v2, 1677722 }
  0x17   :  { %v29_v4 = vsel %vm27_vm0, %v28_v3, 0.0  ;;  %p77_p11 = por %p76_p10, %p75_p9 }
  0x18   :  { %30 = vst [vmem:[#allocation5] sm:$0x3] %v29_v4 }
  0x19   :  { %p78_p12 = pnand %p77_p11, %p71_p8 }
  0x1b   :  { %81 = shalt.err (!%p78_p12)
}
  0x1c   :  { %s82_s27 = scalar_lea.hbm %s142_s2, 32 }
  0x1d   :  { %p83_p13 = scmp.ne.s32.totalorder %s142_s2, %s82_s27  ;;  %p86_p0 = scmp.lt.u32.totalorder %s82_s27, %s142_s2 }
  0x1f   :  { %p88_p1 = pnand %p86_p0, %p83_p13 }
  0x21   :  { %91 = shalt.err (!%p88_p1)
}
  0x22   :  { %40 = dma.vmem_to_hbm [thread:$0]  %s38_s24, 32, %s142_s2, [#allocation4]  }
  0x23   :  { %94 = dma.done.wait [#allocation4], 32  }
  0x24   :  { %95 = vsyncadd [#allocation4], 4294967264 }
  0x25   :  { %44 = vsyncpa [#allocation3], 1 }
  0x26   :  { %45 = vsyncpa [#allocation4], 1 }

</bundles_post_ra>
